<compile_context>
chip_gen: v7x
topology: tpu7x:2x2x1
jax: 0.10.0
libtpu: 0.0.40
codegen_flags: <defaults>
</compile_context>

<pallas_src>
import functools

import jax
import jax.numpy as jnp
from jax.experimental import pallas as pl
from jax.experimental.pallas import tpu as pltpu


def _round_up(x, m):
    return ((x + m - 1) // m) * m


def _attention_gate_kernel(
    g_ref,    # (F_g, tm)     streamed pixels of g (channels on sublanes)
    x_ref,    # (F_l, tm)     streamed pixels of x
    wg_ref,   # (F_int, F_g)  BN-scale-folded, transposed W_g (resident)
    wx_ref,   # (F_int, F_l)  BN-scale-folded, transposed W_x (resident)
    wb_ref,   # (F_int, 3)    [:,0]=wpsi*sp, [:,1]=combined shift, [:,2]=psi shift
    out_ref,  # (F_l, tm)
):
    g = g_ref[...]
    x = x_ref[...]
    wb = wb_ref[...]
    wpsi = wb[:, 0:1]          # (F_int, 1)
    shift = wb[:, 1:2]         # (F_int, 1)
    shp = wb[0:1, 2:3]         # (1, 1)

    # 1x1 conv == channel matmul; pixels stay on the lane axis (MXU, f32 acc).
    g1 = jnp.dot(wg_ref[...], g, preferred_element_type=jnp.float32)   # (F_int, tm)
    x1 = jnp.dot(wx_ref[...], x, preferred_element_type=jnp.float32)   # (F_int, tm)

    # Fused bias+BN shift (scales already folded into the weights), then ReLU.
    s = jnp.maximum(g1 + x1 + shift, 0.0)                              # (F_int, tm)

    # psi: width-1 "conv" as VPU multiply + sublane reduce; keeps the
    # intermediate lane-dense.  (If a bundle dump ever shows VALU as the
    # binding slot for large F_int, switch this to a wpsi^T @ s MXU matmul.)
    psi = jnp.sum(s * wpsi, axis=0, keepdims=True) + shp               # (1, tm)
    psi = jax.nn.sigmoid(psi)

    # Gate: broadcast (1, tm) attention over the F_l channels of x.
    if x.dtype == jnp.bfloat16:
        out = x * psi.astype(jnp.bfloat16)   # bf16 VALU packs 2 elems/lane (v6e/v7x)
    else:
        out = x.astype(jnp.float32) * psi
    out_ref[...] = out.astype(out_ref.dtype)


def _fold_bias_bn(bias, gamma, beta, running_mean, running_var, eps=1e-5):
    """Fold conv bias + eval-mode BatchNorm into per-channel (scale, shift)."""
    inv_std = 1.0 / jnp.sqrt(running_var + eps)
    scale = gamma * inv_std
    shift = (bias - running_mean) * scale + beta
    return scale, shift


def _vmem_plan(F_g, F_l, F_int, bytes_in, bytes_out, HW, N, tm_req):
    """Pick pixel-tile width and an explicit VMEM limit for the current chip."""
    try:
        vmem_cap = int(getattr(pltpu.get_tpu_info(), "vmem_capacity_bytes", 64 << 20))
    except Exception:  # no TPU / older API: assume the smallest (v7x: 64 MiB/TC)
        vmem_cap = 64 << 20
    # ~48 MiB on v7x, ~96 MiB on v5e/v6e: overrides the scoped default (16/32 MiB)
    # while leaving headroom for compiler scratch.
    vmem_limit = min(vmem_cap * 3 // 4, 96 << 20)
    tile_budget = vmem_limit - (8 << 20)
    # Double-buffered g/x/out blocks + f32 temporaries (g1, x1, s) per pixel column.
    per_px = 2 * (F_g + F_l) * bytes_in + 2 * F_l * bytes_out + 3 * F_int * 4 + 16
    tm_max = max(128, (tile_budget // per_px) // 128 * 128)
    tm = min(_round_up(int(tm_req), 128), tm_max, _round_up(HW, 128))
    if N == 1:
        # Keep >= 2 grid steps so both v7x TensorCores get work.
        tm = min(tm, max(128, _round_up(pl.cdiv(HW, 2), 128)))
    return tm, int(vmem_limit)


@functools.partial(jax.jit, static_argnames=("tm", "out_dtype"))
def attention_gate(g_nchw, x_nchw, params, *, tm=2048, out_dtype=None):
    """g_nchw: (N, F_g, H, W), x_nchw: (N, F_l, H, W) -> (N, F_l, H, W)."""
    N, F_g, H, W = g_nchw.shape
    _, F_l, _, _ = x_nchw.shape
    F_int = params["wg"].shape[1]
    HW = H * W
    out_dtype = x_nchw.dtype if out_dtype is None else out_dtype

    # NCHW -> (N, C, H*W): free reshape; no transpose, no pad, no extra HBM pass.
    g3 = g_nchw.reshape(N, F_g, HW)
    x3 = x_nchw.reshape(N, F_l, HW)

    bytes_in = max(jnp.dtype(g_nchw.dtype).itemsize, jnp.dtype(x_nchw.dtype).itemsize)
    bytes_out = jnp.dtype(out_dtype).itemsize
    tm_eff, vmem_limit = _vmem_plan(F_g, F_l, F_int, bytes_in, bytes_out, HW, N, tm)

    # Fold conv bias + eval-mode BN into weights / shifts.
    sg, shg = _fold_bias_bn(params["bg"], params["bn_g_gamma"], params["bn_g_beta"],
                            params["bn_g_mean"], params["bn_g_var"])
    sx, shx = _fold_bias_bn(params["bx"], params["bn_x_gamma"], params["bn_x_beta"],
                            params["bn_x_mean"], params["bn_x_var"])
    sp, shp = _fold_bias_bn(params["bpsi"], params["bn_p_gamma"], params["bn_p_beta"],
                            params["bn_p_mean"], params["bn_p_var"])

    # NOTE: if activations are bf16 the folded weights are cast to bf16 for a
    # native bf16 MXU path; keep them f32 if BN-scale amplification hurts accuracy.
    wg_f = (params["wg"] * sg[None, :]).T.astype(g3.dtype)     # (F_int, F_g)
    wx_f = (params["wx"] * sx[None, :]).T.astype(x3.dtype)     # (F_int, F_l)
    wpsi_f = params["wpsi"] * sp                               # (F_int, 1)
    shift = (shg + shx).reshape(F_int, 1)                      # combined pre-ReLU shift
    shp_b = jnp.broadcast_to(shp.reshape(1, 1), (F_int, 1))
    wb = jnp.concatenate([wpsi_f, shift, shp_b], axis=1).astype(jnp.float32)  # (F_int, 3)

    grid = (N, pl.cdiv(HW, tm_eff))   # partial last pixel block handled by Pallas
    resident = lambda shape: pl.BlockSpec(shape, lambda n, i: (0, 0))

    out3 = pl.pallas_call(
        _attention_gate_kernel,
        out_shape=jax.ShapeDtypeStruct((N, F_l, HW), out_dtype),
        grid_spec=pltpu.PrefetchScalarGridSpec(
            num_scalar_prefetch=0,
            grid=grid,
            in_specs=[
                pl.BlockSpec((None, F_g, tm_eff), lambda n, i: (n, 0, i)),  # g pixels
                pl.BlockSpec((None, F_l, tm_eff), lambda n, i: (n, 0, i)),  # x pixels
                resident((F_int, F_g)),   # W_g (scale-folded, transposed)
                resident((F_int, F_l)),   # W_x
                resident((F_int, 3)),     # [wpsi | shift | psi shift]
            ],
            # TODO(synk): if xprof shows exposed DMA on the g/x streams at small
            # channel counts, add pipeline_mode=pl.Buffered(3) to those specs.
            out_specs=pl.BlockSpec((None, F_l, tm_eff), lambda n, i: (n, 0, i)),
        ),
        compiler_params=pltpu.CompilerParams(
            # Both grid axes are independent -> shardable across v7x's 2 TCs.
            dimension_semantics=("parallel", "parallel"),
            vmem_limit_bytes=vmem_limit),
    )(g3, x3, wg_f, wx_f, wb)

    return out3.reshape(N, F_l, H, W)


def _reference(g_nchw, x_nchw, params):
    """Plain-JAX reference mirroring the PyTorch forward (eval-mode BN)."""
    def branch(inp, w, b, gamma, beta, mean, var):
        y = jnp.einsum("nchw,co->nohw", inp, w) + b[None, :, None, None]
        inv = 1.0 / jnp.sqrt(var + 1e-5)
        return (y - mean[None, :, None, None]) * (gamma * inv)[None, :, None, None] \
            + beta[None, :, None, None]

    g1 = branch(g_nchw, params["wg"], params["bg"], params["bn_g_gamma"],
                params["bn_g_beta"], params["bn_g_mean"], params["bn_g_var"])
    x1 = branch(x_nchw, params["wx"], params["bx"], params["bn_x_gamma"],
                params["bn_x_beta"], params["bn_x_mean"], params["bn_x_var"])
    s = jnp.maximum(g1 + x1, 0.0)
    psi = branch(s, params["wpsi"], params["bpsi"], params["bn_p_gamma"],
                 params["bn_p_beta"], params["bn_p_mean"], params["bn_p_var"])
    psi = jax.nn.sigmoid(psi)
    return x_nchw * psi


def init_params(key, F_g, F_l, F_int):
    ks = jax.random.split(key, 6)
    def conv_init(k, fan_in, shape):
        bound = 1.0 / jnp.sqrt(fan_in)
        return jax.random.uniform(k, shape, jnp.float32, -bound, bound)
    return {
        # 1x1 conv weights stored as (C_in, C_out); glue folds/transposes them.
        "wg": conv_init(ks[0], F_g, (F_g, F_int)),
        "bg": conv_init(ks[1], F_g, (F_int,)),
        "wx": conv_init(ks[2], F_l, (F_l, F_int)),
        "bx": conv_init(ks[3], F_l, (F_int,)),
        "wpsi": conv_init(ks[4], F_int, (F_int, 1)),
        "bpsi": conv_init(ks[5], F_int, (1,)),
        # BatchNorm params/stats (PyTorch defaults).
        "bn_g_gamma": jnp.ones((F_int,), jnp.float32),
        "bn_g_beta": jnp.zeros((F_int,), jnp.float32),
        "bn_g_mean": jnp.zeros((F_int,), jnp.float32),
        "bn_g_var": jnp.ones((F_int,), jnp.float32),
        "bn_x_gamma": jnp.ones((F_int,), jnp.float32),
        "bn_x_beta": jnp.zeros((F_int,), jnp.float32),
        "bn_x_mean": jnp.zeros((F_int,), jnp.float32),
        "bn_x_var": jnp.ones((F_int,), jnp.float32),
        "bn_p_gamma": jnp.ones((1,), jnp.float32),
        "bn_p_beta": jnp.zeros((1,), jnp.float32),
        "bn_p_mean": jnp.zeros((1,), jnp.float32),
        "bn_p_var": jnp.ones((1,), jnp.float32),
    }


if __name__ == "__main__":
    N, F_g, F_l, F_int = 2, 4, 4, 8
    key = jax.random.PRNGKey(0)
    kg, kx, kp = jax.random.split(key, 3)
    params = init_params(kp, F_g, F_l, F_int)

    # Case 1: lane-aligned spatial size.
    H, W = 16, 16
    g = jax.random.normal(kg, (N, F_g, H, W), jnp.float32)
    x = jax.random.normal(kx, (N, F_l, H, W), jnp.float32)
    out = jax.block_until_ready(attention_gate(g, x, params))
    ref = _reference(g, x, params)
    assert out.shape == (N, F_l, H, W)
    assert jnp.allclose(out, ref, atol=1e-5, rtol=1e-5), "mismatch (aligned HW)"

    # Case 2: non-128-multiple spatial size -> exercises the partial last block
    # (replaces the old pad-and-slice path).
    H2, W2 = 9, 13
    g2 = jax.random.normal(kg, (N, F_g, H2, W2), jnp.float32)
    x2 = jax.random.normal(kx, (N, F_l, H2, W2), jnp.float32)
    out2 = jax.block_until_ready(attention_gate(g2, x2, params))
    ref2 = _reference(g2, x2, params)
    assert out2.shape == (N, F_l, H2, W2)
    assert jnp.allclose(out2, ref2, atol=1e-5, rtol=1e-5), "mismatch (partial block)"

    print("KERNEL_OK")
</pallas_src>

<mosaic_0001>
module attributes {stable_mosaic.version = 11 : i64} {
  func.func @_attention_gate_kernel(%arg0: i32, %arg1: i32, %arg2: memref<1x4x256xf32, #tpu.memory_space<vmem>>, %arg3: memref<1x4x256xf32, #tpu.memory_space<vmem>>, %arg4: memref<8x4xf32, #tpu.memory_space<vmem>>, %arg5: memref<8x4xf32, #tpu.memory_space<vmem>>, %arg6: memref<8x3xf32, #tpu.memory_space<vmem>>, %arg7: memref<1x4x256xf32, #tpu.memory_space<vmem>>) attributes {dimension_semantics = [#tpu.dimension_semantics<parallel>, #tpu.dimension_semantics<parallel>], iteration_bounds = array<i64: 2, 1>, scalar_prefetch = 0 : i64, scratch_operands = 0 : i64, tpu.core_type = #tpu.core_type<tc>, window_params = [{transform_indices = @transform_0, window_bounds = array<i64: 1, 4, 256>}, {transform_indices = @transform_1, window_bounds = array<i64: 1, 4, 256>}, {pipeline_mode = #tpu.pipeline_mode<synchronous>, transform_indices = @transform_2, window_bounds = array<i64: 8, 4>}, {pipeline_mode = #tpu.pipeline_mode<synchronous>, transform_indices = @transform_3, window_bounds = array<i64: 8, 4>}, {pipeline_mode = #tpu.pipeline_mode<synchronous>, transform_indices = @transform_4, window_bounds = array<i64: 8, 3>}, {transform_indices = @transform_5, window_bounds = array<i64: 1, 4, 256>}]} {
    %c0 = arith.constant 0 : index
    %c0_0 = arith.constant 0 : index
    %c0_1 = arith.constant 0 : index
    %0 = vector.load %arg2[%c0, %c0_0, %c0_1] : memref<1x4x256xf32, #tpu.memory_space<vmem>>, vector<1x4x256xf32>
    %1 = vector.shape_cast %0 : vector<1x4x256xf32> to vector<4x256xf32>
    %c0_2 = arith.constant 0 : index
    %c0_3 = arith.constant 0 : index
    %c0_4 = arith.constant 0 : index
    %2 = vector.load %arg3[%c0_2, %c0_3, %c0_4] : memref<1x4x256xf32, #tpu.memory_space<vmem>>, vector<1x4x256xf32>
    %3 = vector.shape_cast %2 : vector<1x4x256xf32> to vector<4x256xf32>
    %c0_5 = arith.constant 0 : index
    %c0_6 = arith.constant 0 : index
    %4 = vector.load %arg6[%c0_5, %c0_6] : memref<8x3xf32, #tpu.memory_space<vmem>>, vector<8x3xf32>
    %5 = vector.extract_strided_slice %4 {offsets = [0, 0], sizes = [8, 1], strides = [1, 1]} : vector<8x3xf32> to vector<8x1xf32>
    %6 = vector.extract_strided_slice %4 {offsets = [0, 1], sizes = [8, 1], strides = [1, 1]} : vector<8x3xf32> to vector<8x1xf32>
    %7 = vector.extract_strided_slice %4 {offsets = [0, 2], sizes = [1, 1], strides = [1, 1]} : vector<8x3xf32> to vector<1x1xf32>
    %c0_7 = arith.constant 0 : index
    %c0_8 = arith.constant 0 : index
    %8 = vector.load %arg4[%c0_7, %c0_8] : memref<8x4xf32, #tpu.memory_space<vmem>>, vector<8x4xf32>
    %cst = arith.constant dense<0.000000e+00> : vector<8x256xf32>
    %9 = tpu.matmul %8, %1, %cst {dimension_numbers = #tpu.dot_dimension_numbers<[1], [0], [0], [1], [0, 0, 1, 1], [], []>} : vector<8x4xf32>, vector<4x256xf32>, vector<8x256xf32> -> vector<8x256xf32>
    %c0_9 = arith.constant 0 : index
    %c0_10 = arith.constant 0 : index
    %10 = vector.load %arg5[%c0_9, %c0_10] : memref<8x4xf32, #tpu.memory_space<vmem>>, vector<8x4xf32>
    %cst_11 = arith.constant dense<0.000000e+00> : vector<8x256xf32>
    %11 = tpu.matmul %10, %3, %cst_11 {dimension_numbers = #tpu.dot_dimension_numbers<[1], [0], [0], [1], [0, 0, 1, 1], [], []>} : vector<8x4xf32>, vector<4x256xf32>, vector<8x256xf32> -> vector<8x256xf32>
    %12 = arith.addf %9, %11 : vector<8x256xf32>
    %13 = vector.broadcast %6 : vector<8x1xf32> to vector<8x256xf32>
    %14 = arith.addf %12, %13 : vector<8x256xf32>
    %cst_12 = arith.constant 0.000000e+00 : f32
    %15 = vector.broadcast %cst_12 : f32 to vector<8x256xf32>
    %16 = arith.maximumf %14, %15 : vector<8x256xf32>
    %17 = vector.broadcast %5 : vector<8x1xf32> to vector<8x256xf32>
    %18 = arith.mulf %16, %17 : vector<8x256xf32>
    %cst_13 = arith.constant dense<0.000000e+00> : vector<256xf32>
    %19 = vector.multi_reduction <add>, %18, %cst_13 [0] : vector<8x256xf32> to vector<256xf32>
    %20 = vector.shape_cast %19 : vector<256xf32> to vector<1x256xf32>
    %21 = vector.broadcast %7 : vector<1x1xf32> to vector<1x256xf32>
    %22 = arith.addf %20, %21 : vector<1x256xf32>
    %23 = arith.negf %22 : vector<1x256xf32>
    %24 = math.exp %23 : vector<1x256xf32>
    %cst_14 = arith.constant 1.000000e+00 : f32
    %25 = vector.broadcast %cst_14 : f32 to vector<1x256xf32>
    %26 = arith.addf %25, %24 : vector<1x256xf32>
    %27 = arith.divf %25, %26 : vector<1x256xf32>
    %28 = vector.broadcast %27 : vector<1x256xf32> to vector<4x256xf32>
    %29 = arith.mulf %3, %28 : vector<4x256xf32>
    %c0_15 = arith.constant 0 : index
    %c0_16 = arith.constant 0 : index
    %c0_17 = arith.constant 0 : index
    %30 = vector.load %arg7[%c0_15, %c0_16, %c0_17] : memref<1x4x256xf32, #tpu.memory_space<vmem>>, vector<1x4x256xf32>
    %31 = vector.shape_cast %30 : vector<1x4x256xf32> to vector<4x256xf32>
    %32 = vector.shape_cast %29 : vector<4x256xf32> to vector<1x4x256xf32>
    tpu.vector_store %arg7[%c0_15, %c0_16, %c0_17], %32 {strides = array<i32>} : memref<1x4x256xf32, #tpu.memory_space<vmem>>, vector<1x4x256xf32>,
    return
  }
  func.func @transform_0(%arg0: i32, %arg1: i32) -> (i32, i32, i32) {
    %c0_i32 = arith.constant 0 : i32
    %c0_i32_0 = arith.constant 0 : i32
    return %arg0, %c0_i32, %arg1 : i32, i32, i32
  }
  func.func @transform_1(%arg0: i32, %arg1: i32) -> (i32, i32, i32) {
    %c0_i32 = arith.constant 0 : i32
    %c0_i32_0 = arith.constant 0 : i32
    return %arg0, %c0_i32, %arg1 : i32, i32, i32
  }
  func.func @transform_2(%arg0: i32, %arg1: i32) -> (i32, i32) {
    %c0_i32 = arith.constant 0 : i32
    %c0_i32_0 = arith.constant 0 : i32
    %c0_i32_1 = arith.constant 0 : i32
    return %c0_i32, %c0_i32_0 : i32, i32
  }
  func.func @transform_3(%arg0: i32, %arg1: i32) -> (i32, i32) {
    %c0_i32 = arith.constant 0 : i32
    %c0_i32_0 = arith.constant 0 : i32
    %c0_i32_1 = arith.constant 0 : i32
    return %c0_i32, %c0_i32_0 : i32, i32
  }
  func.func @transform_4(%arg0: i32, %arg1: i32) -> (i32, i32) {
    %c0_i32 = arith.constant 0 : i32
    %c0_i32_0 = arith.constant 0 : i32
    %c0_i32_1 = arith.constant 0 : i32
    return %c0_i32, %c0_i32_0 : i32, i32
  }
  func.func @transform_5(%arg0: i32, %arg1: i32) -> (i32, i32, i32) {
    %c0_i32 = arith.constant 0 : i32
    %c0_i32_0 = arith.constant 0 : i32
    return %arg0, %c0_i32, %arg1 : i32, i32, i32
  }
}

</mosaic_0001>

<bundles_post_ra>
// kernel: attention_gate.1
= control target key start
LH: loop header
LB: loop body
LE: loop exit
PB: predicated region body
PF: predicated region fallthrough
CT: control target
= control target key end

     0   :  { %s757_s18 = smov 0   ;;  %s759_s19 = smov 0   ;;  %s813_s0 = inlined_call_operand.vmem [shape: f32[2,4,256], index: 0, kind: input, shape index: {}]   ;;  %s814_s1 = inlined_call_operand.vmem [shape: f32[2,4,256], index: 1, kind: input, shape index: {}]   ;;  %s815_s2 = inlined_call_operand.vmem [shape: f32[8,4], index: 2, kind: input, shape index: {}]   ;;  %s816_s3 = inlined_call_operand.vmem [shape: f32[8,4], index: 3, kind: input, shape index: {}]   ;;  %s817_s4 = inlined_call_operand.vmem [shape: f32[8,3], index: 4, kind: input, shape index: {}]   ;;  %s818_s5 = inlined_call_operand.vmem [shape: f32[2,4,256], index: 5, kind: output, shape index: {}]  }
   0x1   :  { %s761_s20 = smov 0  }
   0x2 LB: > { %s27_s21 = sadd.s32 1, %s717_s19  ;;  %p635_p0 = scmp.ge.s32.totalorder %s721_s20, 1  ;;  %s721_s20 = sphi %s761_s20, %s15_s20   ;;  %s717_s19 = sphi %s759_s19, %s820_s19   ;;  %s713_s18 = sphi %s757_s18, %s819_s18  }
   0x3   : > { %p29_p1 = scmp.ge.s32.totalorder %s27_s21, 2  ;;  %p225_p2 = scmp.lt.s32.totalorder %s721_s20, 3 }
   0x5   : > { %s822_s21 = smov (%p29_p1, %s27_s21), 0  ;;  %p226_p3 = pnand %p635_p0, %p225_p2 }
   0x6   : > { %p271_p4 = scmp.lt.s32.totalorder (!%p226_p3), %s713_s18, 1  ;;  %v723_v0 = vmov (!%p226_p3), 0.0   ;;  %v302_v1 = vld [vmem:[%s817_s4] sm:$0xff] (!%p226_p3)  ;;  %v724_v2 = vmov (!%p226_p3), 1   ;;  %v725_v3 = vmov (!%p226_p3), 2   ;;  %vm311_vm0 = vcmask (!%p226_p3), 1043456  }
   0x7   : > { %229 = sbr.rel (%p226_p3) target bundleno = 291 (0x123), region = 40  ;;  %380 = vmatprep.mubr.f32.mxu1 (!%p226_p3), %v723_v0  ;;  %460 = vmatprep.mubr.f32.mxu0 (!%p226_p3), %v723_v0  ;;  %v726_v7 = vmov (!%p226_p3), 0   ;;  %v304_v9 = vld [vmem:[%s816_s3] sm:$0xff] (!%p226_p3)  ;;  %vm307_vm1 = vcmask (!%p226_p3), 31744   ;;  %v512_v45 = vlaneseq (!%p226_p3) }
   0x8   : > { %685 = vset.pattern.permute.xlu0 (!%p226_p3), %v724_v2  ;;  %687 = vset.pattern.permute.xlu1 (!%p226_p3), %v725_v3  ;;  %v303_v10 = vld [vmem:[%s815_s2] sm:$0xff] (!%p226_p3) }
   0x9   : > { %469 = vperm.xlu0 (!%p226_p3), %685, %v302_v1   ;;  %495 = vperm.xlu1 (!%p226_p3), %687, %v302_v1   ;;  %v513_v47 = vshrl.u32 (!%p226_p3), %v512_v45, 7 }
   0xb   : > { %v514_v48 = vsub.s32 (!%p226_p3), 0, %v513_v47 }
   0xd   : > { %686 = vset.pattern.permute.xlu0 (!%p226_p3), %v726_v7 }
   0xe   : > { %s824_s18 = smov (!%p271_p4, %s713_s18), 1  ;;  %477 = vperm.xlu0 %686, %v302_v1  }
   0xf   : > { %s778_s24 = sshll.u32 %s824_s18, 3 }
  0x10   : > { %s288_s27 = scalar_lea.vmem %s814_s1, %s778_s24  ;;  %s278_s30 = scalar_lea.vmem %s813_s0, %s778_s24 }
  0x11   : > { %v784_v4 = vld [vmem:[%s288_s27] sm:$0xff]  ;;  %s298_s12 = scalar_lea.vmem %s818_s5, %s778_s24 }
  0x12   : > { %v306_v5 = vcombine.high %v784_v4, %v784_v4  ;;  %v300_v6 = vld [vmem:[%s278_s30] sm:$0xff]  ;;  %688 = vset.pattern.permute.xlu0 %v725_v3 }
  0x13   : > { %v388_v8 = vcombine.high %v300_v6, %v300_v6 }
  0x14   : > { %642 = vmatprep.subr.msk.mxu1 %vm311_vm0, %v306_v5 }
  0x15   : > { %645 = vmatprep.subr.msk.mxu0 %vm311_vm0, %v388_v8  ;;  %643 = vmatpush1.msk.msra.mxu1 %vm311_vm0, %v784_v4 }
  0x16   : > { %646 = vmatpush1.msk.msra.mxu0 %vm311_vm0, %v300_v6  ;;  %644 = vmatmul.mubr.msk.f32.vlgmr.msra.gmra.mrb[0].mxu1 %vm307_vm1, %v304_v9 }
  0x17   : > { %647 = vmatmul.mubr.msk.f32.vlgmr.msra.gmra.mrb[0].mxu0 %vm307_vm1, %v303_v10 }
  0x88   : > { %v470_v11 = vpop.permute.xlu0 %469  ;;  %v496_v34 = vpop.permute.xlu1 %495 }
  0x8d   : > { %v478_v20 = vpop.permute.xlu0 %477 }
  0xe9   : > { %v382_v12 = vpop.f32.mrb[0].mxu1 }
  0xea   : > { %v462_v13 = vpop.f32.mrb[0].mxu0  ;;  %v384_v14 = vpop.f32.mrb[1].mxu1 }
  0xeb   : > { %v463_v15 = vadd.f32 %v462_v13, %v382_v12  ;;  %v464_v16 = vpop.f32.mrb[1].mxu0 }
  0xec   : > { %v465_v17 = vadd.f32 %v464_v16, %v384_v14 }
  0xed   : > { %v472_v18 = vadd.f32 %v470_v11, %v463_v15 }
  0xee   : > { %v473_v19 = vadd.f32 %v470_v11, %v465_v17 }
  0xef   : > { %v474_v21 = vmax.f32 %v472_v18, 0.0 }
  0xf0   : > { %v475_v22 = vmax.f32 %v473_v19, 0.0 }
  0xf1   : > { %v480_v23 = vmul.f32 %v478_v20, %v474_v21 }
  0xf2   : > { %v481_v24 = vmul.f32 %v478_v20, %v475_v22 }
  0xf3   : > { %v482_v25 = vrot.slane %v480_v23, 4 }
  0xf4   : > { %v488_v26 = vrot.slane %v481_v24, 4 }
  0xf5   : > { %v483_v27 = vadd.f32 %v482_v25, %v480_v23 }
  0xf6   : > { %v489_v28 = vadd.f32 %v488_v26, %v481_v24 }
  0xf7   : > { %v484_v29 = vrot.slane %v483_v27, 2 }
  0xf8   : > { %v490_v30 = vrot.slane %v489_v28, 2 }
  0xf9   : > { %v485_v31 = vadd.f32 %v484_v29, %v483_v27 }
  0xfa   : > { %v491_v32 = vadd.f32 %v490_v30, %v489_v28 }
  0xfb   : > { %v486_v33 = vrot.slane %v485_v31, 1 }
  0xfc   : > { %v492_v35 = vrot.slane %v491_v32, 1 }
  0xfd   : > { %v487_v36 = vadd.f32 %v486_v33, %v485_v31 }
  0xfe   : > { %v493_v37 = vadd.f32 %v492_v35, %v491_v32 }
  0xff   : > { %v498_v38 = vadd.f32 %v496_v34, %v487_v36 }
 0x100   : > { %v499_v39 = vadd.f32 %v496_v34, %v493_v37 }
 0x101   : > { %v648_v40 = vmul.f32 -1.442695, %v498_v38 }
 0x102   : > { %v649_v41 = vmul.f32 -1.442695, %v499_v39 }
 0x103   : > { %691 = vpow2.f32 %v648_v40 }
 0x104   : > { %693 = vpow2.f32 %v649_v41 }
 0x10d   : > { %v692_v42 = vpop.eup %691 }
 0x10e   : > { %v694_v43 = vpop.eup %693  ;;  %v506_v44 = vadd.f32 1.0, %v692_v42 }
 0x10f   : > { %v507_v46 = vadd.f32 1.0, %v694_v43 }
 0x110   : > { %695 = vrcp.f32 %v506_v44 }
 0x111   : > { %697 = vrcp.f32 %v507_v46 }
 0x11a   : > { %v696_v49 = vpop.eup %695 }
 0x11b   : > { %v698_v50 = vpop.eup %697  ;;  %v515_v51 = vrot.slane %v696_v49, %v514_v48 }
 0x11c   : > { %v519_v52 = vrot.slane %v698_v50, %v514_v48 }
 0x11e   : > { %v522_v53 = vcombine.low %v515_v51, %v519_v52 }
 0x120   : > { %v524_v54 = vmul.f32 %v522_v53, %v784_v4 }
 0x122   : > { %525 = vst [vmem:[%s298_s12] sm:$0xff] %v524_v54 }
 0x123 PF: > { %s15_s20 = sadd.s32 1, %s721_s20   ;;  %s819_s18 = smov %s717_s19 }
 0x124   : > { %p12_p5 = scmp.ge.s32.totalorder %s15_s20, 4   ;;  %s820_s19 = smov %s822_s21 }
 0x126   :  { %14 = sbr.rel (!%p12_p5) target bundleno = 2 (0x2), region = 73 }

</bundles_post_ra>
